<compile_context>
chip_gen: v5e
topology: v5e:2x2
jax: 0.10.0
libtpu: 0.0.40
codegen_flags: <defaults>
</compile_context>

<pallas_src>
import functools

import jax
import jax.numpy as jnp
from jax.experimental import pallas as pl
from jax.experimental.pallas import tpu as pltpu


# ----------------------------- fused Pallas kernel ---------------------------


def _bottleneck_kernel(x_ref, mask_ref, w1_ref, b1_ref, w2_ref, b2_ref,
                       w3_ref, b3_ref, o_ref, *, W):
    """One batch-block: 1x1+bn+relu -> 3x3+bn+relu -> 1x1+bn+add+relu.

    Activations are (C, L) with L = nb*H*W on the lane axis.
    """
    x = x_ref[0]                                     # (Cin, L) f32, also residual
    L = x.shape[1]

    # ---- stage 1: 1x1 conv (BN1 scale pre-folded) + bias + ReLU ----
    o1 = jnp.dot(w1_ref[...], x.astype(jnp.bfloat16),
                 preferred_element_type=jnp.float32)
    o1 = jnp.maximum(o1 + b1_ref[...], 0.0)          # (Cmid_pad, L) f32

    # ---- stage 2: 3x3 conv (pad=1) as ONE im2col matmul ----
    # Each tap is o1 shifted along the flattened lane axis via pltpu.roll;
    # precomputed border masks zero both the zero-padding positions and any
    # lanes that wrapped across an image boundary.  Taps stay register/VMEM
    # resident (no scratch round-trip).
    taps = []
    for kh in range(3):
        for kw in range(3):
            dh, dw = kh - 1, kw - 1
            d = dh * W + dw                          # flat shift of this tap
            sh = o1 if (dh, dw) == (0, 0) else pltpu.roll(o1, (-d) % L, axis=1)
            if (dh, dw) != (0, 0):
                t = kh * 3 + kw
                sh = sh * mask_ref[pl.ds(t, 1), :]   # (1, L) broadcast mask
            taps.append(sh)
    col = jnp.concatenate(taps, axis=0).astype(jnp.bfloat16)  # (9*Cmid_pad, L)
    o2 = jnp.dot(w2_ref[...], col, preferred_element_type=jnp.float32)
    o2 = jnp.maximum(o2 + b2_ref[...], 0.0)          # (Cmid_pad, L) f32

    # ---- stage 3: 1x1 conv + bias + identity residual + ReLU ----
    o3 = jnp.dot(w3_ref[...], o2.astype(jnp.bfloat16),
                 preferred_element_type=jnp.float32)
    o_ref[0] = jnp.maximum(o3 + b3_ref[...] + x, 0.0).astype(o_ref.dtype)


# ------------------------------ host wrapper ---------------------------------


def _fold_bn(gamma, beta, mean, var, eps=1e-5):
    scale = gamma / jnp.sqrt(var + eps)
    bias = beta - mean * scale
    return scale.astype(jnp.float32), bias.astype(jnp.float32)


def _border_masks(H, W, nb):
    """(9, nb*H*W) f32 keep-masks reproducing exact zero-padding for 3x3 taps."""
    P = H * W
    pos = jnp.arange(P)
    row = pos // W
    col = pos % W
    rows = []
    for kh in range(3):
        for kw in range(3):
            dh, dw = kh - 1, kw - 1
            m = jnp.ones((P,), bool)
            if dh == -1:
                m = m & (row > 0)
            if dh == 1:
                m = m & (row < H - 1)
            if dw == -1:
                m = m & (col > 0)
            if dw == 1:
                m = m & (col < W - 1)
            rows.append(m)
    masks = jnp.stack(rows).astype(jnp.float32)      # (9, P)
    return jnp.tile(masks, (1, nb))                  # (9, nb*P); lane = n*P + p


def bottleneck_forward(x_nchw, params, *, batch_block=None):
    """Pallas Bottleneck.forward (stride=1, downsample=None, eval-mode BN)."""
    N, Cin, H, W = x_nchw.shape
    P = H * W
    Cmid = params["w1"].shape[1]
    Cout = params["w3"].shape[1]
    assert Cin == Cout, "identity residual requires inplanes == planes * 4"

    nb = N if batch_block is None else batch_block   # images folded per grid step
    assert N % nb == 0
    G = N // nb
    L = nb * P

    Cmid_p = ((Cmid + 7) // 8) * 8                   # sublane-align mid channels

    s1, b1 = _fold_bn(params["g1"], params["b1"], params["m1"], params["v1"])
    s2, b2 = _fold_bn(params["g2"], params["b2"], params["m2"], params["v2"])
    s3, b3 = _fold_bn(params["g3"], params["b3"], params["m3"], params["v3"])

    # Fold BN scales into conv weights, lay out as (Cout, K), zero-pad the mid
    # channel dim to Cmid_p (padded rows/cols are zero => contribute nothing),
    # cast MXU operands to bf16.  Biases stay f32.
    w1s = (params["w1"] * s1[None, :]).T                               # (Cmid, Cin)
    w1s = jnp.pad(w1s, ((0, Cmid_p - Cmid), (0, 0))).astype(jnp.bfloat16)
    b1c = jnp.pad(b1, (0, Cmid_p - Cmid)).reshape(Cmid_p, 1)

    w2s = params["w2"] * s2[None, None, None, :]                       # (3,3,Cmid,Cmid)
    w2s = jnp.transpose(w2s, (3, 0, 1, 2))                             # (Co,3,3,Ci)
    w2s = jnp.pad(w2s, ((0, Cmid_p - Cmid), (0, 0), (0, 0), (0, Cmid_p - Cmid)))
    w2f = w2s.reshape(Cmid_p, 9 * Cmid_p).astype(jnp.bfloat16)         # (Cmid_p, 9*Cmid_p)
    b2c = jnp.pad(b2, (0, Cmid_p - Cmid)).reshape(Cmid_p, 1)

    w3s = (params["w3"] * s3[None, :]).T                               # (Cout, Cmid)
    w3s = jnp.pad(w3s, ((0, 0), (0, Cmid_p - Cmid))).astype(jnp.bfloat16)
    b3c = b3.reshape(Cout, 1)

    masks = _border_masks(H, W, nb)                                    # (9, L)

    # Lane-dense fold: (N, Cin, H, W) -> (G, Cin, nb*P), lane index = n*P + p.
    x_f = (x_nchw.reshape(G, nb, Cin, P)
           .transpose(0, 2, 1, 3)
           .reshape(G, Cin, L)
           .astype(jnp.float32))

    out = pl.pallas_call(
        functools.partial(_bottleneck_kernel, W=W),
        grid=(G,),
        in_specs=[
            pl.BlockSpec((1, Cin, L), lambda g: (g, 0, 0)),
            pl.BlockSpec((9, L), lambda g: (0, 0)),
            pl.BlockSpec((Cmid_p, Cin), lambda g: (0, 0)),
            pl.BlockSpec((Cmid_p, 1), lambda g: (0, 0)),
            pl.BlockSpec((Cmid_p, 9 * Cmid_p), lambda g: (0, 0)),
            pl.BlockSpec((Cmid_p, 1), lambda g: (0, 0)),
            pl.BlockSpec((Cout, Cmid_p), lambda g: (0, 0)),
            pl.BlockSpec((Cout, 1), lambda g: (0, 0)),
        ],
        out_specs=pl.BlockSpec((1, Cout, L), lambda g: (g, 0, 0)),
        out_shape=jax.ShapeDtypeStruct((G, Cout, L), jnp.float32),
        compiler_params=pltpu.CompilerParams(dimension_semantics=("parallel",)),
    )(x_f, masks, w1s, b1c, w2f, b2c, w3s, b3c)

    # Un-fold the batch from the lane axis.
    return (out.reshape(G, Cout, nb, P)
            .transpose(0, 2, 1, 3)
            .reshape(N, Cout, H, W))


# ---------------------------- pure-JAX reference -----------------------------


def bottleneck_reference(x_nchw, params, eps=1e-5):
    x = jnp.transpose(x_nchw, (0, 2, 3, 1)).astype(jnp.float32)  # NHWC
    Cin = x.shape[-1]
    Cmid = params["w1"].shape[1]
    Cout = params["w3"].shape[1]
    dn = ("NHWC", "HWIO", "NHWC")

    def bn(y, g, b, m, v):
        return (y - m) / jnp.sqrt(v + eps) * g + b

    y = jax.lax.conv_general_dilated(
        x, params["w1"].reshape(1, 1, Cin, Cmid), (1, 1), "VALID",
        dimension_numbers=dn)
    y = jnp.maximum(bn(y, params["g1"], params["b1"], params["m1"], params["v1"]), 0.0)
    y = jax.lax.conv_general_dilated(
        y, params["w2"], (1, 1), "SAME", dimension_numbers=dn)
    y = jnp.maximum(bn(y, params["g2"], params["b2"], params["m2"], params["v2"]), 0.0)
    y = jax.lax.conv_general_dilated(
        y, params["w3"].reshape(1, 1, Cmid, Cout), (1, 1), "VALID",
        dimension_numbers=dn)
    y = bn(y, params["g3"], params["b3"], params["m3"], params["v3"]) + x
    y = jnp.maximum(y, 0.0)
    return jnp.transpose(y, (0, 3, 1, 2))


# ----------------------------------- main ------------------------------------


if __name__ == "__main__":
    # Bottleneck(inplanes=16, planes=4): identity residual requires
    # inplanes == planes * expansion = 16.
    N, Cin, H, W = 2, 16, 16, 16
    planes = 4
    Cmid, Cout = planes, planes * 4  # 4, 16

    key = jax.random.PRNGKey(0)
    ks = jax.random.split(key, 16)
    x = jax.random.normal(ks[0], (N, Cin, H, W), jnp.float32)

    def bn_params(k0, k1, k2, k3, c):
        return dict(
            gamma=jax.random.normal(k0, (c,), jnp.float32) * 0.1 + 1.0,
            beta=jax.random.normal(k1, (c,), jnp.float32) * 0.1,
            mean=jax.random.normal(k2, (c,), jnp.float32) * 0.1,
            var=jax.random.uniform(k3, (c,), jnp.float32, 0.5, 1.5),
        )

    bn1 = bn_params(ks[4], ks[5], ks[6], ks[7], Cmid)
    bn2 = bn_params(ks[8], ks[9], ks[10], ks[11], Cmid)
    bn3 = bn_params(ks[12], ks[13], ks[14], ks[15], Cout)

    params = dict(
        # conv weights stored channels-last: (Cin, Cout) / (kh, kw, Cin, Cout)
        w1=jax.random.normal(ks[1], (Cin, Cmid), jnp.float32) * 0.1,
        w2=jax.random.normal(ks[2], (3, 3, Cmid, Cmid), jnp.float32) * 0.1,
        w3=jax.random.normal(ks[3], (Cmid, Cout), jnp.float32) * 0.1,
        g1=bn1["gamma"], b1=bn1["beta"], m1=bn1["mean"], v1=bn1["var"],
        g2=bn2["gamma"], b2=bn2["beta"], m2=bn2["mean"], v2=bn2["var"],
        g3=bn3["gamma"], b3=bn3["beta"], m3=bn3["mean"], v3=bn3["var"],
    )

    out = bottleneck_forward(x, params)
    out = jax.block_until_ready(out)

    ref = jax.block_until_ready(bottleneck_reference(x, params))
    assert out.shape == (N, Cout, H, W), out.shape
    # bf16 MXU operands vs f32 reference -> loosened tolerance (per perf review).
    assert jnp.allclose(out, ref, atol=3e-2, rtol=3e-2), float(
        jnp.max(jnp.abs(out - ref)))

    print("KERNEL_OK")
</pallas_src>

<mosaic_0001>
module attributes {stable_mosaic.version = 11 : i64} {
  func.func @_bottleneck_kernel(%arg0: i32, %arg1: memref<1x16x512xf32, #tpu.memory_space<vmem>>, %arg2: memref<9x512xf32, #tpu.memory_space<vmem>>, %arg3: memref<8x16xbf16, #tpu.memory_space<vmem>>, %arg4: memref<8x1xf32, #tpu.memory_space<vmem>>, %arg5: memref<8x72xbf16, #tpu.memory_space<vmem>>, %arg6: memref<8x1xf32, #tpu.memory_space<vmem>>, %arg7: memref<16x8xbf16, #tpu.memory_space<vmem>>, %arg8: memref<16x1xf32, #tpu.memory_space<vmem>>, %arg9: memref<1x16x512xf32, #tpu.memory_space<vmem>>) attributes {dimension_semantics = [#tpu.dimension_semantics<parallel>], iteration_bounds = array<i64: 1>, scalar_prefetch = 0 : i64, scratch_operands = 0 : i64, tpu.core_type = #tpu.core_type<tc>, window_params = [{transform_indices = @transform_0, window_bounds = array<i64: 1, 16, 512>}, {pipeline_mode = #tpu.pipeline_mode<synchronous>, transform_indices = @transform_1, window_bounds = array<i64: 9, 512>}, {pipeline_mode = #tpu.pipeline_mode<synchronous>, transform_indices = @transform_2, window_bounds = array<i64: 8, 16>}, {pipeline_mode = #tpu.pipeline_mode<synchronous>, transform_indices = @transform_3, window_bounds = array<i64: 8, 1>}, {pipeline_mode = #tpu.pipeline_mode<synchronous>, transform_indices = @transform_4, window_bounds = array<i64: 8, 72>}, {pipeline_mode = #tpu.pipeline_mode<synchronous>, transform_indices = @transform_5, window_bounds = array<i64: 8, 1>}, {pipeline_mode = #tpu.pipeline_mode<synchronous>, transform_indices = @transform_6, window_bounds = array<i64: 16, 8>}, {pipeline_mode = #tpu.pipeline_mode<synchronous>, transform_indices = @transform_7, window_bounds = array<i64: 16, 1>}, {transform_indices = @transform_8, window_bounds = array<i64: 1, 16, 512>}]} {
    %c0 = arith.constant 0 : index
    %c0_0 = arith.constant 0 : index
    %c0_1 = arith.constant 0 : index
    %0 = vector.load %arg1[%c0, %c0_0, %c0_1] : memref<1x16x512xf32, #tpu.memory_space<vmem>>, vector<1x16x512xf32>
    %1 = vector.shape_cast %0 : vector<1x16x512xf32> to vector<16x512xf32>
    %c0_2 = arith.constant 0 : index
    %c0_3 = arith.constant 0 : index
    %2 = vector.load %arg3[%c0_2, %c0_3] : memref<8x16xbf16, #tpu.memory_space<vmem>>, vector<8x16xbf16>
    %3 = arith.truncf %1 : vector<16x512xf32> to vector<16x512xbf16>
    %cst = arith.constant dense<0.000000e+00> : vector<8x512xf32>
    %4 = tpu.matmul %2, %3, %cst {dimension_numbers = #tpu.dot_dimension_numbers<[1], [0], [0], [1], [0, 0, 1, 1], [], []>} : vector<8x16xbf16>, vector<16x512xbf16>, vector<8x512xf32> -> vector<8x512xf32>
    %c0_4 = arith.constant 0 : index
    %c0_5 = arith.constant 0 : index
    %5 = vector.load %arg4[%c0_4, %c0_5] : memref<8x1xf32, #tpu.memory_space<vmem>>, vector<8x1xf32>
    %6 = vector.broadcast %5 : vector<8x1xf32> to vector<8x512xf32>
    %7 = arith.addf %4, %6 : vector<8x512xf32>
    %cst_6 = arith.constant 0.000000e+00 : f32
    %8 = vector.broadcast %cst_6 : f32 to vector<8x512xf32>
    %9 = arith.maximumf %7, %8 : vector<8x512xf32>
    %c17_i32 = arith.constant 17 : i32
    %10 = tpu.dynamic_rotate %9 by %c17_i32 dim 1 : vector<8x512xf32>, i32 -> vector<8x512xf32>
    %c0_7 = arith.constant 0 : index
    %c0_8 = arith.constant 0 : index
    %11 = vector.load %arg2[%c0_7, %c0_8] : memref<9x512xf32, #tpu.memory_space<vmem>>, vector<1x512xf32>
    %12 = vector.broadcast %11 : vector<1x512xf32> to vector<8x512xf32>
    %13 = arith.mulf %10, %12 : vector<8x512xf32>
    %c16_i32 = arith.constant 16 : i32
    %14 = tpu.dynamic_rotate %9 by %c16_i32 dim 1 : vector<8x512xf32>, i32 -> vector<8x512xf32>
    %c1 = arith.constant 1 : index
    %c0_9 = arith.constant 0 : index
    %15 = vector.load %arg2[%c1, %c0_9] : memref<9x512xf32, #tpu.memory_space<vmem>>, vector<1x512xf32>
    %16 = vector.broadcast %15 : vector<1x512xf32> to vector<8x512xf32>
    %17 = arith.mulf %14, %16 : vector<8x512xf32>
    %c15_i32 = arith.constant 15 : i32
    %18 = tpu.dynamic_rotate %9 by %c15_i32 dim 1 : vector<8x512xf32>, i32 -> vector<8x512xf32>
    %c2 = arith.constant 2 : index
    %c0_10 = arith.constant 0 : index
    %19 = vector.load %arg2[%c2, %c0_10] : memref<9x512xf32, #tpu.memory_space<vmem>>, vector<1x512xf32>
    %20 = vector.broadcast %19 : vector<1x512xf32> to vector<8x512xf32>
    %21 = arith.mulf %18, %20 : vector<8x512xf32>
    %c1_i32 = arith.constant 1 : i32
    %22 = tpu.dynamic_rotate %9 by %c1_i32 dim 1 : vector<8x512xf32>, i32 -> vector<8x512xf32>
    %c3 = arith.constant 3 : index
    %c0_11 = arith.constant 0 : index
    %23 = vector.load %arg2[%c3, %c0_11] : memref<9x512xf32, #tpu.memory_space<vmem>>, vector<1x512xf32>
    %24 = vector.broadcast %23 : vector<1x512xf32> to vector<8x512xf32>
    %25 = arith.mulf %22, %24 : vector<8x512xf32>
    %c511_i32 = arith.constant 511 : i32
    %26 = tpu.dynamic_rotate %9 by %c511_i32 dim 1 : vector<8x512xf32>, i32 -> vector<8x512xf32>
    %c5 = arith.constant 5 : index
    %c0_12 = arith.constant 0 : index
    %27 = vector.load %arg2[%c5, %c0_12] : memref<9x512xf32, #tpu.memory_space<vmem>>, vector<1x512xf32>
    %28 = vector.broadcast %27 : vector<1x512xf32> to vector<8x512xf32>
    %29 = arith.mulf %26, %28 : vector<8x512xf32>
    %c497_i32 = arith.constant 497 : i32
    %30 = tpu.dynamic_rotate %9 by %c497_i32 dim 1 : vector<8x512xf32>, i32 -> vector<8x512xf32>
    %c6 = arith.constant 6 : index
    %c0_13 = arith.constant 0 : index
    %31 = vector.load %arg2[%c6, %c0_13] : memref<9x512xf32, #tpu.memory_space<vmem>>, vector<1x512xf32>
    %32 = vector.broadcast %31 : vector<1x512xf32> to vector<8x512xf32>
    %33 = arith.mulf %30, %32 : vector<8x512xf32>
    %c496_i32 = arith.constant 496 : i32
    %34 = tpu.dynamic_rotate %9 by %c496_i32 dim 1 : vector<8x512xf32>, i32 -> vector<8x512xf32>
    %c7 = arith.constant 7 : index
    %c0_14 = arith.constant 0 : index
    %35 = vector.load %arg2[%c7, %c0_14] : memref<9x512xf32, #tpu.memory_space<vmem>>, vector<1x512xf32>
    %36 = vector.broadcast %35 : vector<1x512xf32> to vector<8x512xf32>
    %37 = arith.mulf %34, %36 : vector<8x512xf32>
    %c495_i32 = arith.constant 495 : i32
    %38 = tpu.dynamic_rotate %9 by %c495_i32 dim 1 : vector<8x512xf32>, i32 -> vector<8x512xf32>
    %c8 = arith.constant 8 : index
    %c0_15 = arith.constant 0 : index
    %39 = vector.load %arg2[%c8, %c0_15] : memref<9x512xf32, #tpu.memory_space<vmem>>, vector<1x512xf32>
    %40 = vector.broadcast %39 : vector<1x512xf32> to vector<8x512xf32>
    %41 = arith.mulf %38, %40 : vector<8x512xf32>
    %42 = tpu.concatenate %13, %17, %21, %25, %9, %29, %33, %37, %41 in 0 : vector<8x512xf32>, vector<8x512xf32>, vector<8x512xf32>, vector<8x512xf32>, vector<8x512xf32>, vector<8x512xf32>, vector<8x512xf32>, vector<8x512xf32>, vector<8x512xf32> -> vector<72x512xf32>
    %43 = arith.truncf %42 : vector<72x512xf32> to vector<72x512xbf16>
    %c0_16 = arith.constant 0 : index
    %c0_17 = arith.constant 0 : index
    %44 = vector.load %arg5[%c0_16, %c0_17] : memref<8x72xbf16, #tpu.memory_space<vmem>>, vector<8x72xbf16>
    %cst_18 = arith.constant dense<0.000000e+00> : vector<8x512xf32>
    %45 = tpu.matmul %44, %43, %cst_18 {dimension_numbers = #tpu.dot_dimension_numbers<[1], [0], [0], [1], [0, 0, 1, 1], [], []>} : vector<8x72xbf16>, vector<72x512xbf16>, vector<8x512xf32> -> vector<8x512xf32>
    %c0_19 = arith.constant 0 : index
    %c0_20 = arith.constant 0 : index
    %46 = vector.load %arg6[%c0_19, %c0_20] : memref<8x1xf32, #tpu.memory_space<vmem>>, vector<8x1xf32>
    %47 = vector.broadcast %46 : vector<8x1xf32> to vector<8x512xf32>
    %48 = arith.addf %45, %47 : vector<8x512xf32>
    %cst_21 = arith.constant 0.000000e+00 : f32
    %49 = vector.broadcast %cst_21 : f32 to vector<8x512xf32>
    %50 = arith.maximumf %48, %49 : vector<8x512xf32>
    %c0_22 = arith.constant 0 : index
    %c0_23 = arith.constant 0 : index
    %51 = vector.load %arg7[%c0_22, %c0_23] : memref<16x8xbf16, #tpu.memory_space<vmem>>, vector<16x8xbf16>
    %52 = arith.truncf %50 : vector<8x512xf32> to vector<8x512xbf16>
    %cst_24 = arith.constant dense<0.000000e+00> : vector<16x512xf32>
    %53 = tpu.matmul %51, %52, %cst_24 {dimension_numbers = #tpu.dot_dimension_numbers<[1], [0], [0], [1], [0, 0, 1, 1], [], []>} : vector<16x8xbf16>, vector<8x512xbf16>, vector<16x512xf32> -> vector<16x512xf32>
    %c0_25 = arith.constant 0 : index
    %c0_26 = arith.constant 0 : index
    %54 = vector.load %arg8[%c0_25, %c0_26] : memref<16x1xf32, #tpu.memory_space<vmem>>, vector<16x1xf32>
    %55 = vector.broadcast %54 : vector<16x1xf32> to vector<16x512xf32>
    %56 = arith.addf %53, %55 : vector<16x512xf32>
    %57 = arith.addf %56, %1 : vector<16x512xf32>
    %cst_27 = arith.constant 0.000000e+00 : f32
    %58 = vector.broadcast %cst_27 : f32 to vector<16x512xf32>
    %59 = arith.maximumf %57, %58 : vector<16x512xf32>
    %c0_28 = arith.constant 0 : index
    %c0_29 = arith.constant 0 : index
    %c0_30 = arith.constant 0 : index
    %60 = vector.load %arg9[%c0_28, %c0_29, %c0_30] : memref<1x16x512xf32, #tpu.memory_space<vmem>>, vector<1x16x512xf32>
    %61 = vector.shape_cast %60 : vector<1x16x512xf32> to vector<16x512xf32>
    %62 = vector.shape_cast %59 : vector<16x512xf32> to vector<1x16x512xf32>
    tpu.vector_store %arg9[%c0_28, %c0_29, %c0_30], %62 {strides = array<i32>} : memref<1x16x512xf32, #tpu.memory_space<vmem>>, vector<1x16x512xf32>,
    return
  }
  func.func @transform_0(%arg0: i32) -> (i32, i32, i32) {
    %c0_i32 = arith.constant 0 : i32
    %c0_i32_0 = arith.constant 0 : i32
    %c0_i32_1 = arith.constant 0 : i32
    return %arg0, %c0_i32, %c0_i32_0 : i32, i32, i32
  }
  func.func @transform_1(%arg0: i32) -> (i32, i32) {
    %c0_i32 = arith.constant 0 : i32
    %c0_i32_0 = arith.constant 0 : i32
    %c0_i32_1 = arith.constant 0 : i32
    return %c0_i32, %c0_i32_0 : i32, i32
  }
  func.func @transform_2(%arg0: i32) -> (i32, i32) {
    %c0_i32 = arith.constant 0 : i32
    %c0_i32_0 = arith.constant 0 : i32
    %c0_i32_1 = arith.constant 0 : i32
    return %c0_i32, %c0_i32_0 : i32, i32
  }
  func.func @transform_3(%arg0: i32) -> (i32, i32) {
    %c0_i32 = arith.constant 0 : i32
    %c0_i32_0 = arith.constant 0 : i32
    %c0_i32_1 = arith.constant 0 : i32
    return %c0_i32, %c0_i32_0 : i32, i32
  }
  func.func @transform_4(%arg0: i32) -> (i32, i32) {
    %c0_i32 = arith.constant 0 : i32
    %c0_i32_0 = arith.constant 0 : i32
    %c0_i32_1 = arith.constant 0 : i32
    return %c0_i32, %c0_i32_0 : i32, i32
  }
  func.func @transform_5(%arg0: i32) -> (i32, i32) {
    %c0_i32 = arith.constant 0 : i32
    %c0_i32_0 = arith.constant 0 : i32
    %c0_i32_1 = arith.constant 0 : i32
    return %c0_i32, %c0_i32_0 : i32, i32
  }
  func.func @transform_6(%arg0: i32) -> (i32, i32) {
    %c0_i32 = arith.constant 0 : i32
    %c0_i32_0 = arith.constant 0 : i32
    %c0_i32_1 = arith.constant 0 : i32
    return %c0_i32, %c0_i32_0 : i32, i32
  }
  func.func @transform_7(%arg0: i32) -> (i32, i32) {
    %c0_i32 = arith.constant 0 : i32
    %c0_i32_0 = arith.constant 0 : i32
    %c0_i32_1 = arith.constant 0 : i32
    return %c0_i32, %c0_i32_0 : i32, i32
  }
  func.func @transform_8(%arg0: i32) -> (i32, i32, i32) {
    %c0_i32 = arith.constant 0 : i32
    %c0_i32_0 = arith.constant 0 : i32
    %c0_i32_1 = arith.constant 0 : i32
    return %arg0, %c0_i32, %c0_i32_0 : i32, i32, i32
  }
}

</mosaic_0001>

<bundles_post_ra>
// kernel: tpu_custom_call.1
= control target key start
LH: loop header
LB: loop body
LE: loop exit
PB: predicated region body
PF: predicated region fallthrough
CT: control target
= control target key end

     0   :  { %13 = vsyncpa [#allocation3], 0  ;;  %s1072_s0 = inlined_call_operand.hbm [shape: f32[1,16,512], index: 0, kind: input, shape index: {}]   ;;  %s1073_s1 = inlined_call_operand.hbm [shape: f32[9,512], index: 1, kind: input, shape index: {}]   ;;  %s1074_s2 = inlined_call_operand.vmem [shape: bf16[8,16], index: 2, kind: input, shape index: {}]   ;;  %s1075_s3 = inlined_call_operand.vmem [shape: f32[8,1], index: 3, kind: input, shape index: {}]   ;;  %s1076_s4 = inlined_call_operand.vmem [shape: bf16[8,72], index: 4, kind: input, shape index: {}]   ;;  %s1077_s5 = inlined_call_operand.vmem [shape: f32[8,1], index: 5, kind: input, shape index: {}]   ;;  %s1078_s6 = inlined_call_operand.vmem [shape: bf16[16,8], index: 6, kind: input, shape index: {}]   ;;  %s1079_s7 = inlined_call_operand.vmem [shape: f32[16,1], index: 7, kind: input, shape index: {}]   ;;  %s1080_s8 = inlined_call_operand.hbm [shape: f32[1,16,512], index: 8, kind: output, shape index: {}]  }
   0x1   :  { %14 = vsyncpa [#allocation6], 0 }
   0x2   :  { %15 = vsyncpa [#allocation4], 0  ;;  %s20_s29 = sshll.u32 %s1072_s0, 4  ;;  %s718_s30 = smov [#allocation2]   ;;  %s21_s29 = int_to_ptr.hbm [resolvable:$true] %s20_s29 }
   0x3   :  { %s22_s9 = sshll.u32 %s718_s30, 4  ;;  %s33_s12 = sshll.u32 %s1073_s1, 4  ;;  %s23_s9 = int_to_ptr.vmem [resolvable:$true] %s22_s9  ;;  %s34_s12 = int_to_ptr.hbm [resolvable:$true] %s33_s12 }
   0x4   :  { %s719_s13 = smov 512   ;;  %s720_s14 = smov 32  }
   0x5   :  { %28 = dma.hbm_to_vmem [thread:$0]  %s21_s29, 1024, %s23_s9, [#allocation3], %s719_s13, %s719_s13, %s720_s14  }
   0x6   :  { %s721_s15 = smov [#allocation5]  }
   0x7   :  { %s35_s16 = sshll.u32 %s721_s15, 4  ;;  %s36_s16 = int_to_ptr.vmem [resolvable:$true] %s35_s16 }
   0x8   :  { %41 = dma.hbm_to_vmem [thread:$0]  %s34_s12, 1024, %s36_s16, [#allocation6], %s719_s13, %s719_s13, %s720_s14  }
   0x9   :  { %712 = dma.done.wait [#allocation3], 1024  }
   0xa   :  { %713 = vsyncadd [#allocation3], 4294966272 }
   0xb   :  { %714 = dma.done.wait [#allocation6], 1024  }
   0xc   :  { %715 = vsyncadd [#allocation6], 4294966272  ;;  %v722_v0 = vmov 0   ;;  %v789_v1 = vld [vmem:[#allocation2] sm:$0xff]  ;;  %v793_v3 = vld [vmem:[#allocation2 + $0x8] sm:$0xff]  ;;  %vm82_vm0 = vcmask 130048   ;;  %v150_v41 = vlaneseq }
   0xd   :  { %637 = vset.pattern.permute.xlu0 %v722_v0  ;;  %638 = vset.pattern.permute.xlu1 %v722_v0  ;;  %v791_v2 = vld [vmem:[#allocation2 + $0x20] sm:$0xff]  ;;  %v797_v5 = vld [vmem:[#allocation2 + $0x28] sm:$0xff]  ;;  %v799_v6 = vld [vmem:[#allocation2 + $0x10] sm:$0xff]  ;;  %s724_s19 = smov 113   ;;  %s726_s20 = smov 127   ;;  %vm398_vm2 = vcmask 1043456  }
   0xe   :  { %639 = vset.pattern.permute.xlu2 %v722_v0  ;;  %v72_v4 = vpack.c.bf16 %v791_v2, %v789_v1  ;;  %v801_v7 = vld [vmem:[#allocation2 + $0x30] sm:$0xff]  ;;  %v73_v8 = vpack.c.bf16 %v797_v5, %v793_v3  ;;  %v807_v10 = vld [vmem:[#allocation2 + $0x18] sm:$0xff]  ;;  %v71_v13 = vld [vmem:[%s1074_s2] sm:$0xf]  ;;  %s723_s2 = smov 112   ;;  %s727_s21 = smov 15  }
   0xf   :  { %v74_v9 = vpack.c.bf16 %v801_v7, %v799_v6  ;;  %v809_v11 = vld [vmem:[#allocation2 + $0x38] sm:$0xff]  ;;  %v76_v14 = vld [vmem:[%s1075_s3] sm:$0xff]  ;;  %s725_s3 = smov 111   ;;  %s728_s22 = smov 1   ;;  %v892_v44 = vand.u32 127, %v150_v41  ;;  %vm394_vm10 = vcmask 588800  }
  0x10   :  { %93 = vmatpush.bf16.msra.mxu0 %v72_v4  ;;  %v75_v12 = vpack.c.bf16 %v809_v11, %v807_v10  ;;  %106 = vmatpush.bf16.msra.mxu1 %v73_v8  ;;  %s729_s23 = smov 17   ;;  %s730_s24 = smov 16   ;;  %v388_v32 = vld [vmem:[%s1077_s5] sm:$0xff]  ;;  %vm490_vm11 = vcmask 64512  }
  0x11   :  { %119 = vmatpush.bf16.msra.mxu2 %v74_v9  ;;  %79 = vperm.xlu0 %637, %v76_v14   ;;  %v353_v43 = vld [vmem:[#allocation5 + $0x20] ss:$8 sm:$0xf]  ;;  %vm347_vm1 = vcmp.lt.s32.totalorder %v892_v44, 111  ;;  %vm319_vm3 = vcmp.lt.s32.totalorder %v892_v44, 112  ;;  %vm291_vm4 = vcmp.lt.s32.totalorder %v892_v44, 113 }
  0x12   :  { %132 = vmatpush.bf16.msra.mxu3 %v75_v12  ;;  %v355_v45 = vperm.slane %v353_v43, 0  ;;  %v356_v53 = vperm.slane %v353_v43, 1  ;;  %v297_v59 = vld [vmem:[#allocation5 + $0x6] ss:$8 sm:$0xf]  ;;  %v357_v63 = vperm.slane %v353_v43, 2 }
  0x13   :  { %606 = vmatmul.msk.bf16.vlgmr.msra.gmra.mxu0 %vm82_vm0, %v71_v13  ;;  %607 = vmatmul.msk.bf16.vlgmr.msra.gmra.mxu1 %vm82_vm0, %v71_v13  ;;  %v325_v61 = vld [vmem:[#allocation5 + $0x7] ss:$8 sm:$0xf]  ;;  %v358_v0 = vperm.slane %v353_v43, 3  ;;  %v302_v4 = vperm.slane %v297_v59, 3  ;;  %v301_v8 = vperm.slane %v297_v59, 2 }
  0x14   :  { %608 = vmatmul.msk.bf16.vlgmr.msra.gmra.mxu2 %vm82_vm0, %v71_v13  ;;  %v330_v9 = vperm.slane %v325_v61, 3  ;;  %v329_v12 = vperm.slane %v325_v61, 2  ;;  %vm263_vm5 = vcmp.lt.s32.totalorder %v892_v44, 127  ;;  %vm207_vm6 = vcmp.lt.s32.totalorder %v892_v44, 15  ;;  %s592_s15 = sshll.u32 %s1080_s8, 4  ;;  %s593_s15 = int_to_ptr.hbm [resolvable:$true] %s592_s15 }
  0x15   :  { %609 = vmatmul.msk.bf16.vlgmr.msra.gmra.mxu3 %vm82_vm0, %v71_v13  ;;  %v327_v13 = vperm.slane %v325_v61, 0  ;;  %vm235_vm7 = vcmp.lt.s32.totalorder %v892_v44, 1  ;;  %vm152_vm8 = vcmp.lt.s32.totalorder %v892_v44, 17  ;;  %vm179_vm9 = vcmp.lt.s32.totalorder %v892_v44, 16  ;;  %v474_v44 = vld [vmem:[%s1079_s7 + $0x8] sm:$0xff] }
  0x83   :  { %v80_v15 = vpop.permute.xlu0 %79 }
  0x90   :  { %v95_v16 = vpop.f32.mrf.mxu0  ;;  %v108_v18 = vpop.f32.mrf.mxu1 }
  0x91   :  { %v96_v17 = vadd.f32 %v95_v16, %v80_v15  ;;  %v109_v20 = vadd.f32 %v108_v18, %v80_v15  ;;  %v907_v16 = vld [vmem:[#allocation5 + $0x5] ss:$8 sm:$0xf] }
  0x93   :  { %v819_v19 = vmax.f32 %v96_v17, 0.0  ;;  %v826_v26 = vmax.f32 %v109_v20, 0.0 }
  0x95   :  { %311 = vrot.lane.b32.xlu1 %v819_v19, %s723_s2  ;;  %283 = vrot.lane.b32.xlu2 %v819_v19, %s724_s19 }
  0x96   :  { %339 = vrot.lane.b32.xlu0 %v819_v19, %s725_s3 }
  0x97   :  { %v121_v21 = vpop.f32.mrf.mxu2 }
  0x98   :  { %v134_v22 = vpop.f32.mrf.mxu3  ;;  %v97_v23 = vpop.f32.mrf.mxu0  ;;  %v122_v30 = vadd.f32 %v121_v21, %v80_v15 }
  0x99   :  { %v135_v24 = vadd.f32 %v134_v22, %v80_v15  ;;  %v110_v25 = vpop.f32.mrf.mxu1 }
  0x9a   :  { %v840_v31 = vmax.f32 %v122_v30, 0.0  ;;  %v273_v30 = vperm.slane %v907_v16, 2 }
  0x9b   :  { %v828_v27 = vmax.f32 %v135_v24, 0.0 }
  0x9d   :  { %255 = vrot.lane.b32.xlu1 %v819_v19, %s726_s20  ;;  %201 = vrot.lane.b32.xlu2 %v826_v26, %s727_s21 }
  0x9e   :  { %289 = vrot.lane.b32.xlu0 %v828_v27, %s724_s19 }
  0x9f   :  { %v123_v28 = vpop.f32.mrf.mxu2 }
  0xa0   :  { %v136_v29 = vpop.f32.mrf.mxu3 }
  0xa1   :  { %v328_v29 = vperm.slane %v325_v61, 1 }
  0xa5   :  { %341 = vrot.lane.b32.xlu1 %v826_v26, %s725_s3  ;;  %229 = vrot.lane.b32.xlu2 %v826_v26, %s728_s22 }
  0xa6   :  { %317 = vrot.lane.b32.xlu0 %v828_v27, %s723_s2 }
  0xad   :  { %343 = vrot.lane.b32.xlu1 %v840_v31, %s725_s3  ;;  %144 = vrot.lane.b32.xlu2 %v826_v26, %s729_s23 }
  0xae   :  { %313 = vrot.lane.b32.xlu0 %v826_v26, %s723_s2 }
  0xb5   :  { %345 = vrot.lane.b32.xlu1 %v828_v27, %s725_s3  ;;  %173 = vrot.lane.b32.xlu2 %v826_v26, %s730_s24 }
  0xb6   :  { %261 = vrot.lane.b32.xlu0 %v828_v27, %s726_s20 }
  0xbd   :  { %205 = vrot.lane.b32.xlu1 %v828_v27, %s727_s21  ;;  %287 = vrot.lane.b32.xlu2 %v840_v31, %s724_s19 }
  0xbe   :  { %203 = vrot.lane.b32.xlu0 %v840_v31, %s727_s21 }
  0xc5   :  { %233 = vrot.lane.b32.xlu1 %v828_v27, %s728_s22  ;;  %315 = vrot.lane.b32.xlu2 %v840_v31, %s723_s2 }
  0xc6   :  { %231 = vrot.lane.b32.xlu0 %v840_v31, %s728_s22 }
  0xcd   :  { %148 = vrot.lane.b32.xlu1 %v828_v27, %s729_s23  ;;  %259 = vrot.lane.b32.xlu2 %v840_v31, %s726_s20 }
  0xce   :  { %146 = vrot.lane.b32.xlu0 %v840_v31, %s729_s23 }
  0xd5   :  { %177 = vrot.lane.b32.xlu1 %v828_v27, %s730_s24  ;;  %285 = vrot.lane.b32.xlu2 %v826_v26, %s724_s19 }
  0xd6   :  { %175 = vrot.lane.b32.xlu0 %v840_v31, %s730_s24 }
  0xdd   :  { %257 = vrot.lane.b32.xlu1 %v826_v26, %s726_s20  ;;  %199 = vrot.lane.b32.xlu2 %v819_v19, %s727_s21 }
  0xde   :  { %227 = vrot.lane.b32.xlu0 %v819_v19, %s728_s22 }
  0xe5   :  { %142 = vrot.lane.b32.xlu1 %v819_v19, %s729_s23  ;;  %171 = vrot.lane.b32.xlu2 %v819_v19, %s730_s24 }
  0xe6   :  { %391 = vperm.xlu0 %637, %v388_v32   ;;  %v274_v32 = vperm.slane %v907_v16, 3 }
  0xed   :  { %482 = vperm.xlu2 %639, %v474_v44  }
  0xef   :  { %v878_v33 = vpop.permute.xlu2 %283 }
  0xf7   :  { %v880_v34 = vpop.permute.xlu2 %201 }
  0xff   :  { %v882_v35 = vpop.permute.xlu2 %229 }
 0x107   :  { %v884_v36 = vpop.permute.xlu1 %311  ;;  %v886_v37 = vpop.permute.xlu2 %144 }
 0x108   :  { %v340_v38 = vpop.permute.xlu0 %339 }
 0x10f   :  { %v888_v39 = vpop.permute.xlu1 %255  ;;  %v890_v40 = vpop.permute.xlu2 %173 }
 0x110   :  { %v290_v42 = vpop.permute.xlu0 %289 }
 0x111   :  { %v295_v23 = vsel %vm291_vm4, %v290_v42, %v878_v33 }
 0x117   :  { %v342_v46 = vpop.permute.xlu1 %341  ;;  %v895_v47 = vpop.permute.xlu2 %287 }
 0x118   :  { %v350_v48 = vsel %vm347_vm1, %v340_v38, %v342_v46  ;;  %v318_v49 = vpop.permute.xlu0 %317  ;;  %v292_v24 = vsel %vm291_vm4, %v895_v47, %v290_v42 }
 0x119   :  { %v363_v50 = vmul.f32 %v355_v45, %v350_v48  ;;  %v323_v17 = vsel %vm319_vm3, %v318_v49, %v884_v36  ;;  %v309_v48 = vmul.f32 %v301_v8, %v292_v24 }
 0x11a   :  { %v338_v41 = vmul.f32 %v330_v9, %v323_v17 }
 0x11b   :  { %v383_v51 = vpack.c.bf16 %v363_v50, %v363_v50  ;;  %v300_v50 = vperm.slane %v297_v59, 1 }
 0x11d   :  { %v400_v52 = vsel %vm398_vm2, %v383_v51, 0 }
 0x11e   :  { %414 = vmatpush.bf16.msrb.mxu0 %v400_v52 }
 0x11f   :  { %v344_v54 = vpop.permute.xlu1 %343  ;;  %v316_v55 = vpop.permute.xlu2 %315 }
 0x120   :  { %v349_v56 = vsel %vm347_vm1, %v342_v46, %v344_v54  ;;  %v314_v57 = vpop.permute.xlu0 %313  ;;  %v320_v18 = vsel %vm319_vm3, %v316_v55, %v318_v49  ;;  %v310_v46 = vmul.f32 %v302_v4, %v295_v23  ;;  %v299_v49 = vperm.slane %v297_v59, 0 }
 0x121   :  { %v364_v58 = vmul.f32 %v356_v53, %v349_v56  ;;  %v322_v56 = vsel %vm319_vm3, %v884_v36, %v314_v57 }
 0x122   :  { %v382_v61 = vpack.c.bf16 %v338_v41, %v310_v46  ;;  %v335_v8 = vmul.f32 %v327_v13, %v322_v56 }
 0x123   :  { %v384_v60 = vpack.c.bf16 %v364_v58, %v364_v58 }
 0x125   :  { %v403_v62 = vsel %vm398_vm2, %v384_v60, 0 }
 0x126   :  { %427 = vmatpush.bf16.msrb.mxu1 %v403_v62 }
 0x127   :  { %v346_v14 = vpop.permute.xlu1 %345  ;;  %v905_v15 = vpop.permute.xlu2 %259 }
 0x128   :  { %v348_v20 = vsel %vm347_vm1, %v344_v54, %v346_v14  ;;  %v351_v21 = vsel %vm347_vm1, %v346_v14, %v340_v38  ;;  %v262_v22 = vpop.permute.xlu0 %261  ;;  %v337_v38 = vmul.f32 %v329_v12, %v320_v18  ;;  %v321_v54 = vsel %vm319_vm3, %v314_v57, %v316_v55  ;;  %v948_v12 = vld [vmem:[#allocation5 + $0x2] ss:$8 sm:$0xf]  ;;  %v950_v18 = vld [vmem:[#allocation5 + $0x3] ss:$8 sm:$0xf] }
 0x129   :  { %v365_v25 = vmul.f32 %v357_v63, %v348_v20  ;;  %v366_v28 = vmul.f32 %v358_v0, %v351_v21  ;;  %v264_v42 = vsel %vm263_vm5, %v905_v15, %v262_v22  ;;  %v267_v51 = vsel %vm263_vm5, %v262_v22, %v888_v39 }
 0x12a   :  { %v381_v60 = vpack.c.bf16 %v337_v38, %v309_v48  ;;  %v281_v62 = vmul.f32 %v273_v30, %v264_v42  ;;  %v282_v63 = vmul.f32 %v274_v32, %v267_v51  ;;  %v336_v36 = vmul.f32 %v328_v29, %v321_v54  ;;  %v973_v48 = vld [vmem:[#allocation5] ss:$8 sm:$0xf] }
 0x12b   :  { %v385_v43 = vpack.c.bf16 %v365_v25, %v365_v25  ;;  %v386_v45 = vpack.c.bf16 %v366_v28, %v366_v28  ;;  %v218_v13 = vperm.slane %v948_v12, 3  ;;  %v245_v21 = vperm.slane %v950_v18, 2 }
 0x12c   :  { %v378_v20 = vpack.c.bf16 %v282_v63, %v828_v27  ;;  %v246_v22 = vperm.slane %v950_v18, 3  ;;  %v162_v42 = vperm.slane %v973_v48, 3 }
 0x12d   :  { %v406_v52 = vsel %vm398_vm2, %v385_v43, 0  ;;  %v409_v53 = vsel %vm398_vm2, %v386_v45, 0 }
 0x12e   :  { %440 = vmatpush.bf16.msrb.mxu2 %v406_v52  ;;  %453 = vmatpush.bf16.msrb.mxu3 %v409_v53 }
 0x12f   :  { %v940_v58 = vpop.permute.xlu1 %205  ;;  %v286_v59 = vpop.permute.xlu2 %285 }
 0x130   :  { %v293_v0 = vsel %vm291_vm4, %v286_v59, %v895_v47  ;;  %v294_v55 = vsel %vm291_vm4, %v878_v33, %v286_v59  ;;  %v204_v4 = vpop.permute.xlu0 %203  ;;  %v377_v47 = vpack.c.bf16 %v281_v62, %v840_v31  ;;  %v217_v33 = vperm.slane %v948_v12, 2 }
 0x131   :  { %v307_v57 = vmul.f32 %v299_v49, %v294_v55  ;;  %v308_v9 = vmul.f32 %v300_v50, %v293_v0  ;;  %v208_v31 = vsel %vm207_vm6, %v204_v4, %v940_v58  ;;  %v209_v27 = vsel %vm207_vm6, %v880_v34, %v204_v4  ;;  %v976_v49 = vld [vmem:[#allocation5 + $0x1] ss:$8 sm:$0xf] }
 0x132   :  { %441 = vmatpush.bf16.msrb.mxu2 %v381_v60  ;;  %454 = vmatpush.bf16.msrb.mxu3 %v382_v61  ;;  %v225_v29 = vmul.f32 %v217_v33, %v209_v27  ;;  %v226_v30 = vmul.f32 %v218_v13, %v208_v31  ;;  %v161_v50 = vperm.slane %v973_v48, 2  ;;  %v189_v51 = vperm.slane %v976_v49, 2 }
 0x133   :  { %v379_v14 = vpack.c.bf16 %v335_v8, %v307_v57  ;;  %v380_v17 = vpack.c.bf16 %v336_v36, %v308_v9  ;;  %v190_v52 = vperm.slane %v976_v49, 3  ;;  %v271_v57 = vperm.slane %v907_v16, 0 }
 0x134   :  { %v272_v9 = vperm.slane %v907_v16, 1  ;;  %v215_v33 = vperm.slane %v948_v12, 0  ;;  %v216_v13 = vperm.slane %v948_v12, 1 }
 0x135   :  { %415 = vmatpush.bf16.msrb.mxu0 %v379_v14  ;;  %428 = vmatpush.bf16.msrb.mxu1 %v380_v17  ;;  %v387_v14 = vld [vmem:[%s1076_s4] sm:$0xf] }
 0x136   :  { %442 = vmatpush.bf16.msrb.mxu2 %v377_v47  ;;  %455 = vmatpush.bf16.msrb.mxu3 %v378_v20  ;;  %v243_v47 = vperm.slane %v950_v18, 0  ;;  %v244_v20 = vperm.slane %v950_v18, 1 }
 0x137   :  { %v234_v23 = vpop.permute.xlu1 %233  ;;  %v200_v59 = vpop.permute.xlu2 %199 }
 0x138   :  { %v232_v24 = vpop.permute.xlu0 %231 }
 0x139   :  { %v236_v25 = vsel %vm235_vm7, %v232_v24, %v234_v23  ;;  %v237_v28 = vsel %vm235_vm7, %v882_v35, %v232_v24 }
 0x13a   :  { %v253_v32 = vmul.f32 %v245_v21, %v237_v28  ;;  %v254_v41 = vmul.f32 %v246_v22, %v236_v25 }
 0x13c   :  { %v373_v38 = vpack.c.bf16 %v253_v32, %v225_v29  ;;  %v374_v43 = vpack.c.bf16 %v254_v41, %v226_v30  ;;  %v187_v30 = vperm.slane %v976_v49, 0  ;;  %v159_v32 = vperm.slane %v973_v48, 0 }
 0x13e   :  { %443 = vmatpush.bf16.msrb.mxu2 %v373_v38  ;;  %456 = vmatpush.bf16.msrb.mxu3 %v374_v43  ;;  %v160_v38 = vperm.slane %v973_v48, 1 }
 0x13f   :  { %v971_v45 = vpop.permute.xlu1 %148  ;;  %v172_v12 = vpop.permute.xlu2 %171 }
 0x140   :  { %v147_v46 = vpop.permute.xlu0 %146 }
 0x141   :  { %v153_v53 = vsel %vm152_vm8, %v147_v46, %v971_v45  ;;  %v154_v54 = vsel %vm152_vm8, %v886_v37, %v147_v46 }
 0x142   :  { %v169_v63 = vmul.f32 %v161_v50, %v154_v54  ;;  %v170_v0 = vmul.f32 %v162_v42, %v153_v53 }
 0x147   :  { %v178_v56 = vpop.permute.xlu1 %177 }
 0x148   :  { %v176_v60 = vpop.permute.xlu0 %175 }
 0x149   :  { %v180_v61 = vsel %vm179_vm9, %v176_v60, %v178_v56  ;;  %v181_v62 = vsel %vm179_vm9, %v890_v40, %v176_v60 }
 0x14a   :  { %v197_v55 = vmul.f32 %v189_v51, %v181_v62  ;;  %v198_v4 = vmul.f32 %v190_v52, %v180_v61 }
 0x14c   :  { %v369_v8 = vpack.c.bf16 %v197_v55, %v169_v63  ;;  %v370_v36 = vpack.c.bf16 %v198_v4, %v170_v0  ;;  %v622_v4 = vld [vmem:[%s1078_s6] sm:$0xff]  ;;  %s731_s6 = smov [#allocation7]  }
 0x14e   :  { %444 = vmatpush.bf16.msrb.mxu2 %v369_v8  ;;  %457 = vmatpush.bf16.msrb.mxu3 %v370_v36 }
 0x14f   :  { %v258_v17 = vpop.permute.xlu1 %257 }
 0x150   :  { %v265_v16 = vsel %vm263_vm5, %v258_v17, %v905_v15  ;;  %v266_v21 = vsel %vm263_vm5, %v888_v39, %v258_v17  ;;  %v228_v22 = vpop.permute.xlu0 %227  ;;  %v210_v15 = vsel %vm207_vm6, %v200_v59, %v880_v34  ;;  %v211_v39 = vsel %vm207_vm6, %v940_v58, %v200_v59 }
 0x151   :  { %v279_v31 = vmul.f32 %v271_v57, %v266_v21  ;;  %v280_v27 = vmul.f32 %v272_v9, %v265_v16  ;;  %v238_v24 = vsel %vm235_vm7, %v228_v22, %v882_v35  ;;  %v239_v18 = vsel %vm235_vm7, %v234_v23, %v228_v22  ;;  %612 = vmatmul.msk.bf16.vlgmr.msrb.gmra.mxu2 %vm394_vm10, %v387_v14 }
 0x152   :  { %613 = vmatmul.msk.bf16.vlgmr.msrb.gmra.mxu3 %vm394_vm10, %v387_v14  ;;  %v251_v25 = vmul.f32 %v243_v47, %v239_v18  ;;  %v252_v28 = vmul.f32 %v244_v20, %v238_v24  ;;  %v188_v23 = vperm.slane %v976_v49, 1  ;;  %v223_v34 = vmul.f32 %v215_v33, %v211_v39 }
 0x153   :  { %v375_v35 = vpack.c.bf16 %v279_v31, %v819_v19  ;;  %v376_v29 = vpack.c.bf16 %v280_v27, %v826_v26  ;;  %v224_v41 = vmul.f32 %v216_v13, %v210_v15  ;;  %v182_v58 = vsel %vm179_vm9, %v172_v12, %v890_v40 }
 0x154   :  { %v183_v19 = vsel %vm179_vm9, %v178_v56, %v172_v12  ;;  %v371_v43 = vpack.c.bf16 %v251_v25, %v223_v34  ;;  %v196_v50 = vmul.f32 %v188_v23, %v182_v58  ;;  %v483_v58 = vpop.permute.xlu2 %482 }
 0x155   :  { %416 = vmatpush.bf16.msrb.mxu0 %v375_v35  ;;  %429 = vmatpush.bf16.msrb.mxu1 %v376_v29  ;;  %v372_v46 = vpack.c.bf16 %v252_v28, %v224_v41  ;;  %v195_v40 = vmul.f32 %v187_v30, %v183_v19 }
 0x157   :  { %v143_v26 = vpop.permute.xlu1 %142 }
 0x158   :  { %v155_v49 = vsel %vm152_vm8, %v143_v26, %v886_v37  ;;  %v156_v42 = vsel %vm152_vm8, %v971_v45, %v143_v26  ;;  %v473_v37 = vld [vmem:[%s1079_s7] sm:$0xff]  ;;  %v392_v45 = vpop.permute.xlu0 %391  ;;  %s590_s7 = sshll.u32 %s731_s6, 4  ;;  %s591_s7 = int_to_ptr.vmem [resolvable:$true] %s590_s7 }
 0x159   :  { %v167_v51 = vmul.f32 %v159_v32, %v156_v42  ;;  %v168_v52 = vmul.f32 %v160_v38, %v155_v49  ;;  %417 = vmatpush.bf16.msrb.mxu0 %v371_v43  ;;  %430 = vmatpush.bf16.msrb.mxu1 %v372_v46 }
 0x15a   :  { %477 = vperm.xlu1 %638, %v473_v37  }
 0x15b   :  { %v367_v48 = vpack.c.bf16 %v195_v40, %v167_v51  ;;  %v368_v53 = vpack.c.bf16 %v196_v50, %v168_v52 }
 0x15d   :  { %418 = vmatpush.bf16.msrb.mxu0 %v367_v48  ;;  %431 = vmatpush.bf16.msrb.mxu1 %v368_v53 }
 0x160   :  { %610 = vmatmul.msk.bf16.vlgmr.msrb.gmra.mxu0 %vm394_vm10, %v387_v14  ;;  %611 = vmatmul.msk.bf16.vlgmr.msrb.gmra.mxu1 %vm394_vm10, %v387_v14 }
 0x1cc   :  { %v478_v24 = vpop.permute.xlu1 %477 }
 0x1d4   :  { %v446_v54 = vpop.f32.mrf.mxu2 }
 0x1d5   :  { %v447_v56 = vadd.f32 %v446_v54, %v392_v45  ;;  %v459_v59 = vpop.f32.mrf.mxu3 }
 0x1d6   :  { %v460_v60 = vadd.f32 %v459_v59, %v392_v45 }
 0x1d7   :  { %v465_v61 = vmax.f32 %v447_v56, 0.0 }
 0x1d8   :  { %v466_v62 = vmax.f32 %v460_v60, 0.0 }
 0x1d9   :  { %v471_v63 = vpack.c.bf16 %v465_v61, %v465_v61 }
 0x1da   :  { %v472_v0 = vpack.c.bf16 %v466_v62, %v466_v62 }
 0x1db   :  { %v501_v55 = vsel %vm398_vm2, %v471_v63, 0 }
 0x1dc   :  { %v448_v8 = vpop.f32.mrf.mxu2  ;;  %541 = vmatpush.bf16.msra.mxu2 %v501_v55  ;;  %v504_v36 = vsel %vm398_vm2, %v472_v0, 0 }
 0x1dd   :  { %v461_v57 = vpop.f32.mrf.mxu3  ;;  %555 = vmatpush.bf16.msra.mxu3 %v504_v36  ;;  %v420_v9 = vpop.f32.mrf.mxu0 }
 0x1de   :  { %v421_v14 = vadd.f32 %v420_v9, %v392_v45  ;;  %v433_v17 = vpop.f32.mrf.mxu1 }
 0x1df   :  { %v434_v47 = vadd.f32 %v433_v17, %v392_v45  ;;  %620 = vmatmul.msk.bf16.vlgmr.msra.gmra.mxu2 %vm490_vm11, %v622_v4 }
 0x1e0   :  { %v463_v20 = vmax.f32 %v421_v14, 0.0  ;;  %621 = vmatmul.msk.bf16.vlgmr.msra.gmra.mxu3 %vm490_vm11, %v622_v4 }
 0x1e1   :  { %v464_v33 = vmax.f32 %v434_v47, 0.0 }
 0x1e2   :  { %v469_v13 = vpack.c.bf16 %v463_v20, %v463_v20 }
 0x1e3   :  { %v470_v16 = vpack.c.bf16 %v464_v33, %v464_v33 }
 0x1e4   :  { %v495_v21 = vsel %vm398_vm2, %v469_v13, 0 }
 0x1e5   :  { %v422_v22 = vpop.f32.mrf.mxu0  ;;  %513 = vmatpush.bf16.msra.mxu0 %v495_v21  ;;  %v498_v31 = vsel %vm398_vm2, %v470_v16, 0 }
 0x1e6   :  { %v435_v27 = vpop.f32.mrf.mxu1  ;;  %527 = vmatpush.bf16.msra.mxu1 %v498_v31 }
 0x1e8   :  { %618 = vmatmul.msk.bf16.vlgmr.msra.gmra.mxu0 %vm490_vm11, %v622_v4 }
 0x1e9   :  { %619 = vmatmul.msk.bf16.vlgmr.msra.gmra.mxu1 %vm490_vm11, %v622_v4 }
 0x262   :  { %v543_v18 = vpop.f32.mrf.mxu2 }
 0x263   :  { %v557_v15 = vpop.f32.mrf.mxu3  ;;  %v544_v39 = vadd.f32 %v543_v18, %v478_v24 }
 0x264   :  { %v558_v12 = vadd.f32 %v557_v15, %v478_v24 }
 0x265   :  { %v515_v25 = vpop.f32.mrf.mxu0  ;;  %v564_v28 = vadd.f32 %v544_v39, %v799_v6 }
 0x266   :  { %v529_v35 = vpop.f32.mrf.mxu1  ;;  %v516_v29 = vadd.f32 %v515_v25, %v478_v24  ;;  %v565_v23 = vadd.f32 %v558_v12, %v807_v10 }
 0x267   :  { %v530_v30 = vadd.f32 %v529_v35, %v478_v24  ;;  %v572_v32 = vmax.f32 %v564_v28, 0.0 }
 0x268   :  { %v562_v34 = vadd.f32 %v516_v29, %v789_v1  ;;  %v573_v41 = vmax.f32 %v565_v23, 0.0 }
 0x269   :  { %v563_v38 = vadd.f32 %v530_v30, %v793_v3  ;;  %580 = vst [vmem:[#allocation7 + $0x10] sm:$0xff] %v572_v32 }
 0x26a   :  { %v570_v19 = vmax.f32 %v562_v34, 0.0  ;;  %581 = vst [vmem:[#allocation7 + $0x18] sm:$0xff] %v573_v41  ;;  %v545_v26 = vpop.f32.mrf.mxu2 }
 0x26b   :  { %v571_v43 = vmax.f32 %v563_v38, 0.0  ;;  %v546_v46 = vadd.f32 %v545_v26, %v483_v58  ;;  %v559_v50 = vpop.f32.mrf.mxu3 }
 0x26c   :  { %578 = vst [vmem:[#allocation7] sm:$0xff] %v570_v19  ;;  %v560_v6 = vadd.f32 %v559_v50, %v483_v58 }
 0x26d   :  { %579 = vst [vmem:[#allocation7 + $0x8] sm:$0xff] %v571_v43  ;;  %v517_v49 = vpop.f32.mrf.mxu0  ;;  %v568_v10 = vadd.f32 %v546_v46, %v801_v7 }
 0x26e   :  { %v518_v42 = vadd.f32 %v517_v49, %v483_v58  ;;  %v531_v40 = vpop.f32.mrf.mxu1  ;;  %v569_v1 = vadd.f32 %v560_v6, %v809_v11 }
 0x26f   :  { %v532_v51 = vadd.f32 %v531_v40, %v483_v58  ;;  %v576_v52 = vmax.f32 %v568_v10, 0.0 }
 0x270   :  { %v566_v3 = vadd.f32 %v518_v42, %v791_v2  ;;  %v577_v48 = vmax.f32 %v569_v1, 0.0 }
 0x271   :  { %v567_v53 = vadd.f32 %v532_v51, %v797_v5  ;;  %584 = vst [vmem:[#allocation7 + $0x30] sm:$0xff] %v576_v52 }
 0x272   :  { %v574_v37 = vmax.f32 %v566_v3, 0.0  ;;  %585 = vst [vmem:[#allocation7 + $0x38] sm:$0xff] %v577_v48 }
 0x273   :  { %v575_v7 = vmax.f32 %v567_v53, 0.0 }
 0x274   :  { %582 = vst [vmem:[#allocation7 + $0x20] sm:$0xff] %v574_v37 }
 0x275   :  { %583 = vst [vmem:[#allocation7 + $0x28] sm:$0xff] %v575_v7 }
 0x276   :  { %598 = dma.vmem_to_hbm [thread:$0]  %s591_s7, 1024, %s593_s15, [#allocation4], %s719_s13, %s719_s13, %s720_s14  }
 0x277   :  { %716 = dma.done.wait [#allocation4], 1024  }
 0x278   :  { %717 = vsyncadd [#allocation4], 4294966272 }
 0x279   :  { %603 = vsyncpa [#allocation3], 1 }
 0x27a   :  { %604 = vsyncpa [#allocation6], 1 }
 0x27b   :  { %605 = vsyncpa [#allocation4], 1 }

</bundles_post_ra>
